<compile_context>
chip_gen: v7x
topology: tpu7x:2x2x1
jax: 0.10.0
libtpu: 0.0.40
codegen_flags: <defaults>
</compile_context>

<pallas_src>
import jax
import jax.numpy as jnp
from jax.experimental import pallas as pl
from jax.experimental.pallas import tpu as pltpu

D = 768  # roberta-base hidden size


def _linreg_kernel(x1_ref, x2_ref, w_ref, b_ref, o_ref):
    # Fused: s = x1 + x2 ; o = sum(s * w_row, lanes) + b
    # Upcast after load so bf16 inputs travel over HBM at half the bytes.
    s = x1_ref[...].astype(jnp.float32) + x2_ref[...].astype(jnp.float32)  # [TB, D]
    # N=1 "matmul" as VPU multiply + XLU lane reduction (avoids a near-empty
    # MXU tile + result-FIFO pop, which is pure overhead for this shape).
    acc = jnp.sum(s * w_ref[...], axis=-1, keepdims=True)                  # [TB, 1]
    o_ref[...] = acc + b_ref[...]                                          # + bias


def linear_regression_forward(emb1, emb2, weight, bias):
    """emb1, emb2: [B, D] (f32 or bf16); weight: [1, D] (PyTorch layout); bias: [1].

    Returns [B] f32, matching `self.linear(x1 + x2).squeeze(-1)`.
    """
    B, Dm = emb1.shape
    assert Dm == D and emb2.shape == (B, D)

    # Weight kept as a [1, D] row (broadcast over the batch inside the kernel),
    # bias as a [1, 1] tile.
    w = weight.reshape(1, D).astype(jnp.float32)
    b = bias.reshape(1, 1).astype(jnp.float32)

    # Tile size: 1024 rows reaches ~85% of HBM roofline and keeps
    # 2 inputs x 2 buffers x 1024 x 768 x 4B ~= 12.6 MiB of VMEM — safe under
    # the default scoped-VMEM limit on every generation (incl. v7x's 64 MiB).
    # For small batches, use one block padded up to a multiple of 8 sublanes.
    if B >= 1024:
        TB = 1024
    else:
        TB = max(8, ((B + 7) // 8) * 8)

    Bp = pl.cdiv(B, TB) * TB
    if Bp != B:
        pad = Bp - B
        emb1 = jnp.pad(emb1, ((0, pad), (0, 0)))
        emb2 = jnp.pad(emb2, ((0, pad), (0, 0)))

    out = pl.pallas_call(
        _linreg_kernel,
        out_shape=jax.ShapeDtypeStruct((Bp, 1), jnp.float32),
        grid_spec=pltpu.PrefetchScalarGridSpec(
            num_scalar_prefetch=0,
            grid=(Bp // TB,),
            in_specs=[
                pl.BlockSpec((TB, D), lambda i: (i, 0)),  # emb1 tile
                pl.BlockSpec((TB, D), lambda i: (i, 0)),  # emb2 tile
                pl.BlockSpec((1, D), lambda i: (0, 0)),   # weight row (resident)
                pl.BlockSpec((1, 1), lambda i: (0, 0)),   # bias      (resident)
            ],
            out_specs=pl.BlockSpec((TB, 1), lambda i: (i, 0)),
        ),
        compiler_params=pltpu.CompilerParams(
            dimension_semantics=("parallel",)),  # v7x megacore splits batch tiles
    )(emb1, emb2, w, b)

    return out[:B, 0]  # drop padded rows + squeeze(-1)


if __name__ == "__main__":
    key = jax.random.PRNGKey(0)
    k1, k2, kw, kb = jax.random.split(key, 4)

    # Deterministic Linear(768, 1) params (PyTorch default: U(-1/sqrt(D), 1/sqrt(D))).
    bound = 1.0 / (D ** 0.5)
    weight = jax.random.uniform(kw, (1, D), minval=-bound, maxval=bound,
                                dtype=jnp.float32)
    bias = jax.random.uniform(kb, (1,), minval=-bound, maxval=bound,
                              dtype=jnp.float32)

    ok = True
    # B=8 (aligned) and B=10 (exercises the ragged-batch padding path).
    for B in (8, 10):
        kk1, kk2 = jax.random.split(jax.random.fold_in(k1, B), 2)
        emb1 = jax.random.normal(kk1, (B, D), dtype=jnp.float32)
        emb2 = jax.random.normal(kk2, (B, D), dtype=jnp.float32)

        out = linear_regression_forward(emb1, emb2, weight, bias)
        out = jax.block_until_ready(out)

        ref = ((emb1 + emb2) @ weight.T + bias)[:, 0]
        ok = ok and out.shape == (B,) and bool(
            jnp.allclose(out, ref, atol=1e-5, rtol=1e-5))

    assert ok
    print("KERNEL_OK")
</pallas_src>

<mosaic_0001>
module attributes {stable_mosaic.version = 11 : i64} {
  func.func @_linreg_kernel(%arg0: i32, %arg1: memref<8x768xf32, #tpu.memory_space<vmem>>, %arg2: memref<8x768xf32, #tpu.memory_space<vmem>>, %arg3: memref<1x768xf32, #tpu.memory_space<vmem>>, %arg4: memref<1x1xf32, #tpu.memory_space<vmem>>, %arg5: memref<8x1xf32, #tpu.memory_space<vmem>>) attributes {dimension_semantics = [#tpu.dimension_semantics<parallel>], iteration_bounds = array<i64: 1>, scalar_prefetch = 0 : i64, scratch_operands = 0 : i64, tpu.core_type = #tpu.core_type<tc>, window_params = [{transform_indices = @transform_0, window_bounds = array<i64: 8, 768>}, {transform_indices = @transform_1, window_bounds = array<i64: 8, 768>}, {pipeline_mode = #tpu.pipeline_mode<synchronous>, transform_indices = @transform_2, window_bounds = array<i64: 1, 768>}, {pipeline_mode = #tpu.pipeline_mode<synchronous>, transform_indices = @transform_3, window_bounds = array<i64: 1, 1>}, {transform_indices = @transform_4, window_bounds = array<i64: 8, 1>}]} {
    %c0 = arith.constant 0 : index
    %c0_0 = arith.constant 0 : index
    %0 = vector.load %arg1[%c0, %c0_0] : memref<8x768xf32, #tpu.memory_space<vmem>>, vector<8x768xf32>
    %c0_1 = arith.constant 0 : index
    %c0_2 = arith.constant 0 : index
    %1 = vector.load %arg2[%c0_1, %c0_2] : memref<8x768xf32, #tpu.memory_space<vmem>>, vector<8x768xf32>
    %2 = arith.addf %0, %1 : vector<8x768xf32>
    %c0_3 = arith.constant 0 : index
    %c0_4 = arith.constant 0 : index
    %3 = vector.load %arg3[%c0_3, %c0_4] : memref<1x768xf32, #tpu.memory_space<vmem>>, vector<1x768xf32>
    %4 = vector.broadcast %3 : vector<1x768xf32> to vector<8x768xf32>
    %5 = arith.mulf %2, %4 : vector<8x768xf32>
    %cst = arith.constant dense<0.000000e+00> : vector<8xf32>
    %6 = vector.multi_reduction <add>, %5, %cst [1] : vector<8x768xf32> to vector<8xf32>
    %7 = vector.shape_cast %6 : vector<8xf32> to vector<8x1xf32>
    %c0_5 = arith.constant 0 : index
    %c0_6 = arith.constant 0 : index
    %8 = vector.load %arg4[%c0_5, %c0_6] : memref<1x1xf32, #tpu.memory_space<vmem>>, vector<1x1xf32>
    %9 = vector.broadcast %8 : vector<1x1xf32> to vector<8x1xf32>
    %10 = arith.addf %7, %9 : vector<8x1xf32>
    %c0_7 = arith.constant 0 : index
    %c0_8 = arith.constant 0 : index
    %11 = vector.load %arg5[%c0_7, %c0_8] : memref<8x1xf32, #tpu.memory_space<vmem>>, vector<8x1xf32>
    tpu.vector_store %arg5[%c0_7, %c0_8], %10 {strides = array<i32>} : memref<8x1xf32, #tpu.memory_space<vmem>>, vector<8x1xf32>,
    return
  }
  func.func @transform_0(%arg0: i32) -> (i32, i32) {
    %c0_i32 = arith.constant 0 : i32
    %c0_i32_0 = arith.constant 0 : i32
    return %arg0, %c0_i32 : i32, i32
  }
  func.func @transform_1(%arg0: i32) -> (i32, i32) {
    %c0_i32 = arith.constant 0 : i32
    %c0_i32_0 = arith.constant 0 : i32
    return %arg0, %c0_i32 : i32, i32
  }
  func.func @transform_2(%arg0: i32) -> (i32, i32) {
    %c0_i32 = arith.constant 0 : i32
    %c0_i32_0 = arith.constant 0 : i32
    %c0_i32_1 = arith.constant 0 : i32
    return %c0_i32, %c0_i32_0 : i32, i32
  }
  func.func @transform_3(%arg0: i32) -> (i32, i32) {
    %c0_i32 = arith.constant 0 : i32
    %c0_i32_0 = arith.constant 0 : i32
    %c0_i32_1 = arith.constant 0 : i32
    return %c0_i32, %c0_i32_0 : i32, i32
  }
  func.func @transform_4(%arg0: i32) -> (i32, i32) {
    %c0_i32 = arith.constant 0 : i32
    %c0_i32_0 = arith.constant 0 : i32
    return %arg0, %c0_i32 : i32, i32
  }
}

</mosaic_0001>

<bundles_post_ra>
// kernel: tpu_custom_call.1
= control target key start
LH: loop header
LB: loop body
LE: loop exit
PB: predicated region body
PF: predicated region fallthrough
CT: control target
= control target key end

     0   :  { %s233_s0 = inlined_call_operand.hbm [shape: f32[8,768], index: 0, kind: input, shape index: {}]   ;;  %s234_s1 = inlined_call_operand.hbm [shape: f32[8,768], index: 1, kind: input, shape index: {}]   ;;  %s235_s2 = inlined_call_operand.vmem [shape: f32[1,768], index: 2, kind: input, shape index: {}]   ;;  %s236_s3 = inlined_call_operand.<no memory space> [shape: f32[1,1], index: 3, kind: input, shape index: {}]   ;;  %s237_s4 = inlined_call_operand.vmem [shape: f32[8,1], index: 4, kind: output, shape index: {}]  }
   0x1   :  { %v9_v0 = vstv %s236_s3 }
   0x2   :  { %10 = vst [vmem:[#allocation2] sm:$0x1] %v9_v0 }
   0x3   :  { %11 = vsyncpa [#allocation4], 0 }
   0x4   :  { %12 = vsyncpa [#allocation6], 0  ;;  %s173_s17 = smov [#allocation3]   ;;  %s174_s19 = smov [#allocation5]  }
   0x5   :  { %s19_s18 = sshll.u32 %s173_s17, 4  ;;  %s29_s20 = sshll.u32 %s174_s19, 4  ;;  %s20_s18 = int_to_ptr.vmem [resolvable:$true] %s19_s18  ;;  %s30_s20 = int_to_ptr.vmem [resolvable:$true] %s29_s20 }
   0x6   :  { %s125_s23 = scalar_lea.hbm %s233_s0, 768 }
   0x7   :  { %p126_p0 = scmp.ne.s32.totalorder %s233_s0, %s125_s23  ;;  %p129_p1 = scmp.lt.u32.totalorder %s125_s23, %s233_s0 }
   0x9   :  { %p131_p2 = pnand %p129_p1, %p126_p0 }
   0xb   :  { %134 = shalt.err (!%p131_p2)
}
   0xc   :  { %s135_s3 = scalar_lea.vmem %s20_s18, 768  ;;  %p140_p4 = scmp.lt.s32.totalorder %s20_s18, %s20_s18 }
   0xd   :  { %p136_p3 = scmp.ne.s32.totalorder %s20_s18, %s135_s3  ;;  %p141_p5 = scmp.lt.s32.totalorder %s135_s3, %s135_s3 }
   0xf   :  { %p142_p6 = por %p141_p5, %p140_p4 }
  0x11   :  { %p143_p7 = pnand %p142_p6, %p136_p3 }
  0x13   :  { %146 = shalt.err (!%p143_p7)
}
  0x14   :  { %22 = dma.hbm_to_vmem [thread:$0]  %s233_s0, 768, %s20_s18, [#allocation4]  }
  0x15   :  { %s147_s6 = scalar_lea.hbm %s234_s1, 768 }
  0x16   :  { %p148_p8 = scmp.ne.s32.totalorder %s234_s1, %s147_s6  ;;  %p151_p9 = scmp.lt.u32.totalorder %s147_s6, %s234_s1 }
  0x18   :  { %p153_p10 = pnand %p151_p9, %p148_p8 }
  0x1a   :  { %156 = shalt.err (!%p153_p10)
}
  0x1b   :  { %s157_s11 = scalar_lea.vmem %s30_s20, 768  ;;  %p162_p12 = scmp.lt.s32.totalorder %s30_s20, %s30_s20 }
  0x1c   :  { %p158_p11 = scmp.ne.s32.totalorder %s30_s20, %s157_s11  ;;  %p163_p13 = scmp.lt.s32.totalorder %s157_s11, %s157_s11 }
  0x1e   :  { %p164_p0 = por %p163_p13, %p162_p12 }
  0x20   :  { %p165_p1 = pnand %p164_p0, %p158_p11 }
  0x22   :  { %168 = shalt.err (!%p165_p1)
}
  0x23   :  { %32 = dma.hbm_to_vmem [thread:$0]  %s234_s1, 768, %s30_s20, [#allocation6]  }
  0x24   :  { %169 = dma.done.wait [#allocation4], 768  }
  0x25   :  { %170 = vsyncadd [#allocation4], 4294966528 }
  0x26   :  { %171 = dma.done.wait [#allocation6], 768  }
  0x27   :  { %172 = vsyncadd [#allocation6], 4294966528  ;;  %v63_v1 = vlaneseq  ;;  %v43_v3 = vld [vmem:[#allocation3] sm:$0xff]  ;;  %v44_v4 = vld [vmem:[#allocation3 + $0x8] sm:$0xff]  ;;  %vm114_vm0 = vcmask 7168  }
  0x28   :  { %v45_v5 = vld [vmem:[#allocation3 + $0x10] sm:$0xff]  ;;  %v46_v6 = vld [vmem:[#allocation3 + $0x18] sm:$0xff]  ;;  %v51_v13 = vld [vmem:[#allocation5 + $0x10] sm:$0xff] }
  0x29   :  { %v64_v2 = vshrl.u32 %v63_v1, 7  ;;  %v49_v11 = vld [vmem:[#allocation5] sm:$0xff]  ;;  %v50_v12 = vld [vmem:[#allocation5 + $0x8] sm:$0xff]  ;;  %v47_v14 = vld [vmem:[#allocation3 + $0x20] sm:$0xff]  ;;  %v57_v19 = vadd.f32 %v51_v13, %v45_v5 }
  0x2a   :  { %v52_v15 = vld [vmem:[#allocation5 + $0x18] sm:$0xff]  ;;  %v53_v16 = vld [vmem:[#allocation5 + $0x20] sm:$0xff]  ;;  %v55_v17 = vadd.f32 %v49_v11, %v43_v3  ;;  %v56_v18 = vadd.f32 %v50_v12, %v44_v4  ;;  %v61_v22 = vld [vmem:[%s235_s2] sm:$0x3f] }
  0x2b   :  { %v65_v7 = vsub.s32 0, %v64_v2  ;;  %v69_v8 = vsub.s32 1, %v64_v2  ;;  %v73_v9 = vsub.s32 2, %v64_v2  ;;  %v77_v10 = vsub.s32 3, %v64_v2  ;;  %v48_v28 = vld [vmem:[#allocation3 + $0x28] sm:$0xff]  ;;  %v54_v29 = vld [vmem:[#allocation5 + $0x28] sm:$0xff] }
  0x2c   :  { %v81_v20 = vsub.s32 4, %v64_v2  ;;  %v58_v21 = vadd.f32 %v52_v15, %v46_v6  ;;  %v85_v23 = vsub.s32 5, %v64_v2  ;;  %v59_v30 = vadd.f32 %v53_v16, %v47_v14  ;;  %v122_v45 = vld [vmem:[#allocation2] ss:$0 sm:$0xff] }
  0x2d   :  { %v66_v24 = vrot.slane %v61_v22, %v65_v7  ;;  %v70_v25 = vrot.slane %v61_v22, %v69_v8  ;;  %v74_v26 = vrot.slane %v61_v22, %v73_v9  ;;  %v78_v27 = vrot.slane %v61_v22, %v77_v10 }
  0x2e   :  { %v82_v31 = vrot.slane %v61_v22, %v81_v20  ;;  %v60_v35 = vadd.f32 %v54_v29, %v48_v28  ;;  %v86_v36 = vrot.slane %v61_v22, %v85_v23 }
  0x2f   :  { %v93_v32 = vmul.f32 %v66_v24, %v55_v17  ;;  %v94_v33 = vmul.f32 %v70_v25, %v56_v18  ;;  %v95_v34 = vmul.f32 %v74_v26, %v57_v19  ;;  %v96_v37 = vmul.f32 %v78_v27, %v58_v21 }
  0x30   :  { %v97_v39 = vmul.f32 %v82_v31, %v59_v30  ;;  %v98_v41 = vmul.f32 %v86_v36, %v60_v35 }
  0x31   :  { %v99_v38 = vadd.f32 %v94_v33, %v93_v32 }
  0x33   :  { %v100_v40 = vadd.f32 %v99_v38, %v95_v34 }
  0x35   :  { %v101_v42 = vadd.f32 %v100_v40, %v96_v37 }
  0x37   :  { %v102_v43 = vadd.f32 %v101_v42, %v97_v39 }
  0x39   :  { %v103_v44 = vadd.f32 %v102_v43, %v98_v41 }
  0x3b   :  { %104 = vadd.xlane.f32.xlu0 %v103_v44 }
  0xc8   :  { %v105_v46 = vpop.xlane.xlu0 %104 }
  0xc9   :  { %v113_v47 = vadd.f32 %v122_v45, %v105_v46 }
  0xcb   :  { %115 = vst.msk [vmem:[%s237_s4] sm:$0xff] %vm114_vm0, %v113_v47 }
  0xcc   :  { %120 = vsyncpa [#allocation4], 1 }
  0xcd   :  { %121 = vsyncpa [#allocation6], 1 }

</bundles_post_ra>
